<compile_context>
chip_gen: v6e
topology: v6e:2x2x1
jax: 0.10.0
libtpu: 0.0.40
codegen_flags: <defaults>
</compile_context>

<pallas_src>
import functools

import jax
import jax.numpy as jnp
from jax.experimental import pallas as pl
from jax.experimental.pallas import tpu as pltpu

_MIN_DENOM = 1e-15  # geoopt-style clamp_min for the Möbius denominator
# TODO(synk): some hyptorch mobius_add variants use `den + 1e-5` instead of
#             clamp_min(den, 1e-15); match whichever the surrounding repo defines.


def _reference(x, y, c=1.0):
    """Pure-JAX mirror of the PyTorch HyperMSE.forward (also the small-input fast path)."""
    a = -x.T
    b = y.T
    a2 = jnp.sum(a * a, axis=-1, keepdims=True)
    b2 = jnp.sum(b * b, axis=-1, keepdims=True)
    ab = jnp.sum(a * b, axis=-1, keepdims=True)
    num = (1.0 + 2.0 * c * ab + c * b2) * a + (1.0 - c * a2) * b
    den = 1.0 + 2.0 * c * ab + (c ** 2) * a2 * b2
    r = num / jnp.maximum(den, _MIN_DENOM)
    return jnp.mean(r ** 2)


def _hypermse_kernel(x_ref, y_ref, out_ref, acc_ref, *, c):
    """Closed-form per-column partial sums of mobius_add(-x, y)^2 for one lane tile."""
    i = pl.program_id(1)

    @pl.when(i == 0)
    def _():
        acc_ref[...] = jnp.zeros_like(acc_ref)

    xv = x_ref[...].astype(jnp.float32)               # (D, TB)
    yv = y_ref[...].astype(jnp.float32)               # (D, TB)

    # The only D-sized work: three sublane reductions (VPU mul-adds, no XLU).
    x2 = jnp.sum(xv * xv, axis=0, keepdims=True)      # (1, TB) = ||a||^2   (a = -x)
    y2 = jnp.sum(yv * yv, axis=0, keepdims=True)      # (1, TB) = ||b||^2
    xy = jnp.sum(xv * yv, axis=0, keepdims=True)      # (1, TB)

    ab = -xy                                          # <a, b>, sign of a = -x folded in
    alpha = 1.0 + 2.0 * c * ab + c * y2
    beta = 1.0 - c * x2
    den = jnp.maximum(1.0 + 2.0 * c * ab + (c * c) * x2 * y2, _MIN_DENOM)
    # sum over D of r^2 per column (no (D,TB) temporaries, TB divisions per tile):
    num_sq = alpha * alpha * x2 + 2.0 * alpha * beta * ab + beta * beta * y2
    acc_ref[...] += num_sq / (den * den)              # (1, TB) f32 VMEM accumulator

    @pl.when(i == pl.num_programs(1) - 1)
    def _():
        # single cross-lane reduction; lane-dense store of this part's partial sum
        out_ref[...] = jnp.full(out_ref.shape, jnp.sum(acc_ref[...]), dtype=jnp.float32)


def _round_up(v, m):
    return ((v + m - 1) // m) * m


def _pick_lane_tile(D, B, itemsize, lane_tile):
    """Lane tile (multiple of 128): ~2 MiB of input per grid step, double-buffered
    footprint (2 inputs x 2 buffers) <= ~8 MiB -> safe under v5e's 16 MiB scoped default
    and v7x's 32 MiB scoped / 64 MiB physical VMEM."""
    if lane_tile is not None:
        tb = max(128, (lane_tile // 128) * 128)
    else:
        per_col_bytes = 2 * D * itemsize              # one column each of x and y
        tb = max(128, ((2 << 20) // per_col_bytes) // 128 * 128)
    return min(tb, _round_up(B, 128))


def hypermse(x, y, c=1.0, *, num_parts=1, lane_tile=None, min_kernel_bytes=256 << 10):
    """x, y: (D, B) arrays (points are columns, matching the module's x.T / y.T).

    Returns scalar f32 == (mobius_add(-x.T, y.T, c, dim=-1) ** 2).mean()
    """
    D, B = x.shape
    assert y.shape == (D, B), (x.shape, y.shape)
    c = float(c)

    # Small-problem fast path: pallas launch + pipeline setup dominates tiny inputs,
    # and padding a handful of columns to a 128-wide tile multiplies HBM traffic.
    if 2 * D * B * x.dtype.itemsize < min_kernel_bytes:
        return _reference(x, y, c)

    tb = _pick_lane_tile(D, B, x.dtype.itemsize, lane_tile)
    b_pad = _round_up(B, num_parts * tb)
    tiles_per_part = b_pad // (num_parts * tb)

    if b_pad != B:
        pad = ((0, 0), (0, b_pad - B))
        x = jnp.pad(x, pad)                            # zero columns contribute exactly 0
        y = jnp.pad(y, pad)

    in_map = lambda p, i: (0, p * tiles_per_part + i)

    cost = pl.CostEstimate(
        flops=int(8 * D * b_pad),                      # 3 fused mul-adds per element + O(TB) scalar math
        transcendentals=0,
        bytes_accessed=int(2 * D * b_pad * x.dtype.itemsize + num_parts * 128 * 4),
    )

    partial = pl.pallas_call(
        functools.partial(_hypermse_kernel, c=c),
        out_shape=jax.ShapeDtypeStruct((num_parts, 1, 128), jnp.float32),
        grid_spec=pltpu.PrefetchScalarGridSpec(
            num_scalar_prefetch=0,
            grid=(num_parts, tiles_per_part),
            in_specs=[
                pl.BlockSpec((D, tb), in_map),
                pl.BlockSpec((D, tb), in_map),
            ],
            out_specs=pl.BlockSpec((1, 1, 128), lambda p, i: (p, 0, 0)),
            scratch_shapes=[pltpu.VMEM((1, tb), jnp.float32)],
        ),
        # TODO(synk): on v7x pass num_parts=2 and pltpu.CORE_PARALLEL on the outer axis
        #             so the two partial sums land on the two TensorCores.
        compiler_params=pltpu.CompilerParams(
            dimension_semantics=("parallel", "arbitrary")
        ),
        cost_estimate=cost,
    )(x, y)

    return jnp.sum(partial[:, 0, 0]) / jnp.float32(B * D)  # mean over the ORIGINAL (B, D)


if __name__ == "__main__":
    key = jax.random.PRNGKey(0)
    k1, k2, k3, k4 = jax.random.split(key, 4)
    c = 1.0

    # hidden=32 embedding dim, batch=8 columns (the module transposes internally),
    # scaled so points lie inside the unit Poincaré ball.
    D, B = 32, 8
    x_small = 0.1 * jax.random.normal(k1, (D, B), dtype=jnp.float32)
    y_small = 0.1 * jax.random.normal(k2, (D, B), dtype=jnp.float32)
    ref_small = jax.block_until_ready(_reference(x_small, y_small, c))

    # 1) force the Pallas kernel path on the tiny shape
    out1 = jax.block_until_ready(hypermse(x_small, y_small, c, min_kernel_bytes=0))
    assert jnp.allclose(out1, ref_small, rtol=1e-4, atol=1e-6), (out1, ref_small)

    # 2) multi-tile kernel path with lane padding (B not a multiple of the lane tile)
    D2, B2 = 32, 640
    x_big = 0.05 * jax.random.normal(k3, (D2, B2), dtype=jnp.float32)
    y_big = 0.05 * jax.random.normal(k4, (D2, B2), dtype=jnp.float32)
    out2 = jax.block_until_ready(
        hypermse(x_big, y_big, c, lane_tile=256, min_kernel_bytes=0)
    )
    ref_big = jax.block_until_ready(_reference(x_big, y_big, c))
    assert jnp.allclose(out2, ref_big, rtol=1e-4, atol=1e-6), (out2, ref_big)

    # 3) default small-problem fast path agrees as well
    out3 = jax.block_until_ready(hypermse(x_small, y_small, c))
    assert jnp.allclose(out3, ref_small, rtol=1e-4, atol=1e-6), (out3, ref_small)

    print("KERNEL_OK")
</pallas_src>

<mosaic_0001>
module attributes {stable_mosaic.version = 11 : i64} {
  func.func @_hypermse_kernel(%arg0: i32, %arg1: i32, %arg2: memref<32x128xf32, #tpu.memory_space<vmem>>, %arg3: memref<32x128xf32, #tpu.memory_space<vmem>>, %arg4: memref<1x1x128xf32, #tpu.memory_space<vmem>>, %arg5: memref<1x128xf32, #tpu.memory_space<vmem>>) attributes {dimension_semantics = [#tpu.dimension_semantics<parallel>, #tpu.dimension_semantics<arbitrary>], iteration_bounds = array<i64: 1, 1>, scalar_prefetch = 0 : i64, scratch_operands = 1 : i64, tpu.core_type = #tpu.core_type<tc>, window_params = [{transform_indices = @transform_0, window_bounds = array<i64: 32, 128>}, {transform_indices = @transform_1, window_bounds = array<i64: 32, 128>}, {transform_indices = @transform_2, window_bounds = array<i64: 1, 1, 128>}]} {
    %c0_i32 = arith.constant 0 : i32
    %0 = arith.cmpi eq, %arg1, %c0_i32 : i32
    %1 = arith.extui %0 : i1 to i32
    %c0_i32_0 = arith.constant 0 : i32
    %2 = arith.cmpi ne, %1, %c0_i32_0 : i32
    scf.if %2 {
      %cst_23 = arith.constant 0.000000e+00 : f32
      %55 = vector.broadcast %cst_23 : f32 to vector<1x128xf32>
      %c0_24 = arith.constant 0 : index
      %c0_25 = arith.constant 0 : index
      %56 = vector.load %arg5[%c0_24, %c0_25] : memref<1x128xf32, #tpu.memory_space<vmem>>, vector<1x128xf32>
      tpu.vector_store %arg5[%c0_24, %c0_25], %55 {strides = array<i32>} : memref<1x128xf32, #tpu.memory_space<vmem>>, vector<1x128xf32>,
    } else {
    }
    %c0 = arith.constant 0 : index
    %c0_1 = arith.constant 0 : index
    %3 = vector.load %arg2[%c0, %c0_1] : memref<32x128xf32, #tpu.memory_space<vmem>>, vector<32x128xf32>
    %c0_2 = arith.constant 0 : index
    %c0_3 = arith.constant 0 : index
    %4 = vector.load %arg3[%c0_2, %c0_3] : memref<32x128xf32, #tpu.memory_space<vmem>>, vector<32x128xf32>
    %5 = arith.mulf %3, %3 : vector<32x128xf32>
    %cst = arith.constant dense<0.000000e+00> : vector<128xf32>
    %6 = vector.multi_reduction <add>, %5, %cst [0] : vector<32x128xf32> to vector<128xf32>
    %7 = vector.shape_cast %6 : vector<128xf32> to vector<1x128xf32>
    %8 = arith.mulf %4, %4 : vector<32x128xf32>
    %cst_4 = arith.constant dense<0.000000e+00> : vector<128xf32>
    %9 = vector.multi_reduction <add>, %8, %cst_4 [0] : vector<32x128xf32> to vector<128xf32>
    %10 = vector.shape_cast %9 : vector<128xf32> to vector<1x128xf32>
    %11 = arith.mulf %3, %4 : vector<32x128xf32>
    %cst_5 = arith.constant dense<0.000000e+00> : vector<128xf32>
    %12 = vector.multi_reduction <add>, %11, %cst_5 [0] : vector<32x128xf32> to vector<128xf32>
    %13 = vector.shape_cast %12 : vector<128xf32> to vector<1x128xf32>
    %cst_6 = arith.constant 0.000000e+00 : f32
    %14 = vector.broadcast %cst_6 : f32 to vector<1x128xf32>
    %15 = arith.subf %14, %13 : vector<1x128xf32>
    %cst_7 = arith.constant 2.000000e+00 : f32
    %16 = vector.broadcast %cst_7 : f32 to vector<1x128xf32>
    %17 = arith.mulf %16, %15 : vector<1x128xf32>
    %cst_8 = arith.constant 1.000000e+00 : f32
    %18 = vector.broadcast %cst_8 : f32 to vector<1x128xf32>
    %19 = arith.addf %18, %17 : vector<1x128xf32>
    %cst_9 = arith.constant 1.000000e+00 : f32
    %20 = vector.broadcast %cst_9 : f32 to vector<1x128xf32>
    %21 = arith.mulf %20, %10 : vector<1x128xf32>
    %22 = arith.addf %19, %21 : vector<1x128xf32>
    %cst_10 = arith.constant 1.000000e+00 : f32
    %23 = vector.broadcast %cst_10 : f32 to vector<1x128xf32>
    %24 = arith.mulf %23, %7 : vector<1x128xf32>
    %cst_11 = arith.constant 1.000000e+00 : f32
    %25 = vector.broadcast %cst_11 : f32 to vector<1x128xf32>
    %26 = arith.subf %25, %24 : vector<1x128xf32>
    %cst_12 = arith.constant 2.000000e+00 : f32
    %27 = vector.broadcast %cst_12 : f32 to vector<1x128xf32>
    %28 = arith.mulf %27, %15 : vector<1x128xf32>
    %cst_13 = arith.constant 1.000000e+00 : f32
    %29 = vector.broadcast %cst_13 : f32 to vector<1x128xf32>
    %30 = arith.addf %29, %28 : vector<1x128xf32>
    %cst_14 = arith.constant 1.000000e+00 : f32
    %31 = vector.broadcast %cst_14 : f32 to vector<1x128xf32>
    %32 = arith.mulf %31, %7 : vector<1x128xf32>
    %33 = arith.mulf %32, %10 : vector<1x128xf32>
    %34 = arith.addf %30, %33 : vector<1x128xf32>
    %cst_15 = arith.constant 1.000000e-15 : f32
    %35 = vector.broadcast %cst_15 : f32 to vector<1x128xf32>
    %36 = arith.maximumf %34, %35 : vector<1x128xf32>
    %37 = arith.mulf %22, %22 : vector<1x128xf32>
    %38 = arith.mulf %37, %7 : vector<1x128xf32>
    %cst_16 = arith.constant 2.000000e+00 : f32
    %39 = vector.broadcast %cst_16 : f32 to vector<1x128xf32>
    %40 = arith.mulf %39, %22 : vector<1x128xf32>
    %41 = arith.mulf %40, %26 : vector<1x128xf32>
    %42 = arith.mulf %41, %15 : vector<1x128xf32>
    %43 = arith.addf %38, %42 : vector<1x128xf32>
    %44 = arith.mulf %26, %26 : vector<1x128xf32>
    %45 = arith.mulf %44, %10 : vector<1x128xf32>
    %46 = arith.addf %43, %45 : vector<1x128xf32>
    %c0_17 = arith.constant 0 : index
    %c0_18 = arith.constant 0 : index
    %47 = vector.load %arg5[%c0_17, %c0_18] : memref<1x128xf32, #tpu.memory_space<vmem>>, vector<1x128xf32>
    %48 = arith.mulf %36, %36 : vector<1x128xf32>
    %49 = arith.divf %46, %48 : vector<1x128xf32>
    %50 = arith.addf %47, %49 : vector<1x128xf32>
    %c0_19 = arith.constant 0 : index
    %c0_20 = arith.constant 0 : index
    %51 = vector.load %arg5[%c0_19, %c0_20] : memref<1x128xf32, #tpu.memory_space<vmem>>, vector<1x128xf32>
    tpu.vector_store %arg5[%c0_19, %c0_20], %50 {strides = array<i32>} : memref<1x128xf32, #tpu.memory_space<vmem>>, vector<1x128xf32>,
    %c0_i32_21 = arith.constant 0 : i32
    %52 = arith.cmpi eq, %arg1, %c0_i32_21 : i32
    %53 = arith.extui %52 : i1 to i32
    %c0_i32_22 = arith.constant 0 : i32
    %54 = arith.cmpi ne, %53, %c0_i32_22 : i32
    scf.if %54 {
      %c0_23 = arith.constant 0 : index
      %c0_24 = arith.constant 0 : index
      %55 = vector.load %arg5[%c0_23, %c0_24] : memref<1x128xf32, #tpu.memory_space<vmem>>, vector<1x128xf32>
      %56 = vector.shape_cast %55 : vector<1x128xf32> to vector<1x1x128xf32>
      %cst_25 = arith.constant dense<0.000000e+00> : vector<1xf32>
      %57 = vector.multi_reduction <add>, %56, %cst_25 [1, 2] : vector<1x1x128xf32> to vector<1xf32>
      %58 = vector.shape_cast %57 : vector<1xf32> to vector<1x1x1xf32>
      %59 = vector.extract %58[0, 0, 0] : f32 from vector<1x1x1xf32>
      %60 = vector.broadcast %59 : f32 to vector<1x1x128xf32>
      %c0_26 = arith.constant 0 : index
      %c0_27 = arith.constant 0 : index
      %c0_28 = arith.constant 0 : index
      %61 = vector.load %arg4[%c0_26, %c0_27, %c0_28] : memref<1x1x128xf32, #tpu.memory_space<vmem>>, vector<1x1x128xf32>
      tpu.vector_store %arg4[%c0_26, %c0_27, %c0_28], %60 {strides = array<i32>} : memref<1x1x128xf32, #tpu.memory_space<vmem>>, vector<1x1x128xf32>,
    } else {
    }
    return
  }
  func.func @transform_0(%arg0: i32, %arg1: i32) -> (i32, i32) {
    %c1_i32 = arith.constant 1 : i32
    %0 = arith.muli %arg0, %c1_i32 : i32
    %1 = arith.addi %0, %arg1 : i32
    %c0_i32 = arith.constant 0 : i32
    %c0_i32_0 = arith.constant 0 : i32
    return %c0_i32, %1 : i32, i32
  }
  func.func @transform_1(%arg0: i32, %arg1: i32) -> (i32, i32) {
    %c1_i32 = arith.constant 1 : i32
    %0 = arith.muli %arg0, %c1_i32 : i32
    %1 = arith.addi %0, %arg1 : i32
    %c0_i32 = arith.constant 0 : i32
    %c0_i32_0 = arith.constant 0 : i32
    return %c0_i32, %1 : i32, i32
  }
  func.func @transform_2(%arg0: i32, %arg1: i32) -> (i32, i32, i32) {
    %c0_i32 = arith.constant 0 : i32
    %c0_i32_0 = arith.constant 0 : i32
    %c0_i32_1 = arith.constant 0 : i32
    return %arg0, %c0_i32, %c0_i32_0 : i32, i32, i32
  }
}

</mosaic_0001>

<bundles_post_ra>
// kernel: tpu_custom_call.1
= control target key start
LH: loop header
LB: loop body
LE: loop exit
PB: predicated region body
PF: predicated region fallthrough
CT: control target
= control target key end

     0   :  { %7 = vsyncpa [#allocation4], 0  ;;  %s262_s0 = inlined_call_operand.hbm [shape: f32[32,128], index: 0, kind: input, shape index: {}]   ;;  %s263_s1 = inlined_call_operand.hbm [shape: f32[32,128], index: 1, kind: input, shape index: {}]   ;;  %s264_s2 = inlined_call_operand.hbm [shape: f32[1,1,128], index: 2, kind: output, shape index: {}]  }
   0x1   :  { %8 = vsyncpa [#allocation7], 0 }
   0x2   :  { %9 = vsyncpa [#allocation5], 0  ;;  %s232_s9 = smov [#allocation3]  }
   0x3   :  { %s18_s10 = sshll.u32 %s232_s9, 4  ;;  %s19_s10 = int_to_ptr.vmem [resolvable:$true] %s18_s10 }
   0x4   :  { %s174_s11 = scalar_lea.vmem %s19_s10, 512  ;;  %p179_p1 = scmp.lt.s32.totalorder %s19_s10, %s19_s10 }
   0x5   :  { %p175_p0 = scmp.ne.s32.totalorder %s19_s10, %s174_s11  ;;  %p180_p2 = scmp.lt.s32.totalorder %s174_s11, %s174_s11 }
   0x7   :  { %p181_p3 = por %p180_p2, %p179_p1 }
   0x9   :  { %p182_p4 = pnand %p181_p3, %p175_p0 }
   0xb   :  { %185 = shalt.err (!%p182_p4)
}
   0xc   :  { %s233_s12 = smov 128   ;;  %s234_s13 = smov 8  }
   0xd   :  { %24 = dma.hbm_to_vmem [thread:$0]  %s262_s0, 512, %s19_s10, [#allocation4], %s233_s12, %s233_s12, %s234_s13  }
   0xe   :  { %s235_s16 = smov [#allocation6]  }
   0xf   :  { %s33_s17 = sshll.u32 %s235_s16, 4  ;;  %s34_s17 = int_to_ptr.vmem [resolvable:$true] %s33_s17 }
  0x10   :  { %s194_s18 = scalar_lea.vmem %s34_s17, 512  ;;  %p199_p6 = scmp.lt.s32.totalorder %s34_s17, %s34_s17 }
  0x11   :  { %p195_p5 = scmp.ne.s32.totalorder %s34_s17, %s194_s18  ;;  %p200_p7 = scmp.lt.s32.totalorder %s194_s18, %s194_s18 }
  0x13   :  { %p201_p8 = por %p200_p7, %p199_p6 }
  0x15   :  { %p202_p9 = pnand %p201_p8, %p195_p5 }
  0x17   :  { %205 = shalt.err (!%p202_p9)
}
  0x18   :  { %39 = dma.hbm_to_vmem [thread:$0]  %s263_s1, 512, %s34_s17, [#allocation7], %s233_s12, %s233_s12, %s234_s13  }
  0x19   :  { %226 = dma.done.wait [#allocation4], 512  }
  0x1a   :  { %227 = vsyncadd [#allocation4], 4294966784 }
  0x1b   :  { %228 = dma.done.wait [#allocation7], 512  }
  0x1c   :  { %229 = vsyncadd [#allocation7], 4294966784  ;;  %v236_v0 = vmov 0.0   ;;  %v53_v1 = vld [vmem:[#allocation3] sm:$0xff]  ;;  %v54_v2 = vld [vmem:[#allocation3 + $0x8] sm:$0xff]  ;;  %vm127_vm0 = vcmask 1040384  }
  0x1d   :  { %52 = vst [vmem:[#allocation2] sm:$0x1] %v236_v0  ;;  %v55_v3 = vld [vmem:[#allocation3 + $0x10] sm:$0xff]  ;;  %v57_v4 = vld [vmem:[#allocation6] sm:$0xff]  ;;  %v58_v5 = vld [vmem:[#allocation6 + $0x8] sm:$0xff]  ;;  %v61_v6 = vmul.f32 %v53_v1, %v53_v1  ;;  %v62_v7 = vmul.f32 %v54_v2, %v54_v2  ;;  %s237_s0 = smov [#allocation8]  }
  0x1e   :  { %v63_v8 = vmul.f32 %v55_v3, %v55_v3  ;;  %v56_v9 = vld [vmem:[#allocation3 + $0x18] sm:$0xff]  ;;  %v59_v10 = vld [vmem:[#allocation6 + $0x10] sm:$0xff]  ;;  %v74_v12 = vmul.f32 %v57_v4, %v57_v4  ;;  %v75_v13 = vmul.f32 %v58_v5, %v58_v5  ;;  %v87_v14 = vmul.f32 %v57_v4, %v53_v1  ;;  %s146_s1 = sshll.u32 %s237_s0, 4  ;;  %s147_s1 = int_to_ptr.vmem [resolvable:$true] %s146_s1 }
  0x1f   :  { %v60_v11 = vld [vmem:[#allocation6 + $0x18] sm:$0xff]  ;;  %v64_v15 = vmul.f32 %v56_v9, %v56_v9  ;;  %v65_v16 = vadd.f32 %v62_v7, %v61_v6  ;;  %v76_v17 = vmul.f32 %v59_v10, %v59_v10  ;;  %v88_v18 = vmul.f32 %v58_v5, %v54_v2  ;;  %s206_s22 = scalar_lea.vmem %s147_s1, 16  ;;  %s210_s23 = scalar_lea.vmem %s147_s1, 32 }
  0x20   :  { %v77_v19 = vmul.f32 %v60_v11, %v60_v11  ;;  %v78_v20 = vadd.f32 %v75_v13, %v74_v12  ;;  %v89_v21 = vmul.f32 %v59_v10, %v55_v3  ;;  %v90_v23 = vmul.f32 %v60_v11, %v56_v9  ;;  %p207_p10 = scmp.ne.s32.totalorder %s147_s1, %s206_s22  ;;  %p211_p11 = scmp.lt.s32.totalorder %s147_s1, %s147_s1 }
  0x21   :  { %v66_v22 = vadd.f32 %v65_v16, %v63_v8  ;;  %v91_v24 = vadd.f32 %v88_v18, %v87_v14  ;;  %p212_p12 = scmp.lt.s32.totalorder %s210_s23, %s206_s22 }
  0x22   :  { %v79_v25 = vadd.f32 %v78_v20, %v76_v17 }
  0x23   :  { %v67_v26 = vadd.f32 %v66_v22, %v64_v15  ;;  %v92_v27 = vadd.f32 %v91_v24, %v89_v21  ;;  %p213_p13 = por %p212_p12, %p211_p11 }
  0x24   :  { %v80_v28 = vadd.f32 %v79_v25, %v77_v19  ;;  %v117_v3 = vld [vmem:[#allocation2] sm:$0x1] }
  0x25   :  { %v68_v29 = vrot.slane %v67_v26, 4  ;;  %v93_v30 = vadd.f32 %v92_v27, %v90_v23  ;;  %p214_p0 = pnand %p213_p13, %p207_p10 }
  0x26   :  { %v81_v31 = vrot.slane %v80_v28, 4 }
  0x27   :  { %v69_v32 = vadd.f32 %v68_v29, %v67_v26  ;;  %v94_v33 = vrot.slane %v93_v30, 4 }
  0x28   :  { %v82_v34 = vadd.f32 %v81_v31, %v80_v28 }
  0x29   :  { %v70_v35 = vrot.slane %v69_v32, 2  ;;  %v95_v36 = vadd.f32 %v94_v33, %v93_v30 }
  0x2a   :  { %v83_v37 = vrot.slane %v82_v34, 2 }
  0x2b   :  { %v71_v38 = vadd.f32 %v70_v35, %v69_v32  ;;  %v96_v39 = vrot.slane %v95_v36, 2 }
  0x2c   :  { %v84_v40 = vadd.f32 %v83_v37, %v82_v34 }
  0x2d   :  { %v72_v41 = vrot.slane %v71_v38, 1  ;;  %v97_v42 = vadd.f32 %v96_v39, %v95_v36 }
  0x2e   :  { %v85_v43 = vrot.slane %v84_v40, 1 }
  0x2f   :  { %v98_v44 = vrot.slane %v97_v42, 1  ;;  %v73_v45 = vadd.f32 %v72_v41, %v71_v38 }
  0x30   :  { %v86_v46 = vadd.f32 %v85_v43, %v84_v40 }
  0x31   :  { %v99_v47 = vadd.f32 %v98_v44, %v97_v42  ;;  %v104_v53 = vsub.f32 1.0, %v73_v45 }
  0x32   :  { %v105_v50 = vmul.f32 %v86_v46, %v73_v45 }
  0x33   :  { %v100_v48 = vsub.f32 0.0, %v99_v47  ;;  %v114_v62 = vmul.f32 %v104_v53, %v104_v53 }
  0x35   :  { %v101_v49 = vmul.f32 2.0, %v100_v48  ;;  %v115_v0 = vmul.f32 %v114_v62, %v86_v46 }
  0x37   :  { %v102_v51 = vadd.f32 1.0, %v101_v49 }
  0x39   :  { %v103_v52 = vadd.f32 %v102_v51, %v86_v46  ;;  %v106_v54 = vadd.f32 %v105_v50, %v102_v51 }
  0x3b   :  { %v107_v55 = vmax.f32 %v106_v54, 1e-15  ;;  %v110_v56 = vmul.f32 2.0, %v103_v52  ;;  %v108_v57 = vmul.f32 %v103_v52, %v103_v52 }
  0x3d   :  { %v111_v58 = vmul.f32 %v110_v56, %v104_v53  ;;  %v118_v59 = vmul.f32 %v107_v55, %v107_v55  ;;  %v109_v60 = vmul.f32 %v108_v57, %v73_v45 }
  0x3f   :  { %164 = vrcp.f32 %v118_v59  ;;  %v112_v61 = vmul.f32 %v111_v58, %v100_v48 }
  0x41   :  { %v113_v63 = vadd.f32 %v112_v61, %v109_v60 }
  0x43   :  { %v116_v1 = vadd.f32 %v115_v0, %v113_v63 }
  0x4c   :  { %v165_v2 = vpop.eup %164 }
  0x4d   :  { %v120_v4 = vmul.f32 %v165_v2, %v116_v1 }
  0x4f   :  { %v121_v5 = vadd.f32 %v120_v4, %v117_v3 }
  0x51   :  { %122 = vst [vmem:[#allocation2] sm:$0x1] %v121_v5 }
  0x58   :  { %v126_v6 = vld [vmem:[#allocation2] sm:$0x1] }
  0x59   :  { %v128_v7 = vsel %vm127_vm0, %v126_v6, 0.0 }
  0x5a   :  { %129 = vadd.xlane.f32.xlu0 %v128_v7 }
  0xe3   :  { %v130_v8 = vpop.xlane.xlu0 %129 }
  0xe4   :  { %v131_v9 = vrot.slane %v130_v8, 4 }
  0xe6   :  { %v132_v10 = vadd.f32 %v131_v9, %v130_v8 }
  0xe8   :  { %v133_v11 = vrot.slane %v132_v10, 2 }
  0xea   :  { %v134_v12 = vadd.f32 %v133_v11, %v132_v10 }
  0xec   :  { %v135_v13 = vrot.slane %v134_v12, 1 }
  0xee   :  { %v136_v14 = vadd.f32 %v135_v13, %v134_v12 }
  0xf0   :  { %156 = vpush %v136_v14 }
 0x121   :  { %s157_s21 = spop %156 }
 0x122   :  { %v138_v15 = vstv %s157_s21 }
 0x123   :  { %139 = vst [vmem:[#allocation8] sm:$0x1] %v138_v15 }
 0x124   :  { %217 = shalt.err (!%p214_p0)
}
 0x125   :  { %149 = dma.vmem_to_hbm [thread:$0]  %s147_s1, 16, %s264_s2, [#allocation5]  }
 0x126   :  { %230 = dma.done.wait [#allocation5], 16  }
 0x127   :  { %231 = vsyncadd [#allocation5], 4294967280 }
 0x128   :  { %153 = vsyncpa [#allocation4], 1 }
 0x129   :  { %154 = vsyncpa [#allocation7], 1 }
 0x12a   :  { %155 = vsyncpa [#allocation5], 1 }

</bundles_post_ra>
